<compile_context>
chip_gen: v5e
topology: v5e:2x2
jax: 0.10.0
libtpu: 0.0.40
codegen_flags: <defaults>
</compile_context>

<pallas_src>
import functools

import jax
import jax.numpy as jnp
from jax import lax
from jax.experimental import pallas as pl
from jax.experimental.pallas import tpu as pltpu


def _round_up(a, b):
    return (a + b - 1) // b * b


def _cdiv(a, b):
    return (a + b - 1) // b


def _tokenizer_kernel(x_ref, w_ref, o_ref, m_sc, l_sc, acc_sc, *,
                      l_actual, tl, bt):
    # x_ref : (bt, tl, cp)  current batch-block / L-block tile (native dtype)
    # w_ref : (T, cp)       Linear weight (out_features, in_features), padded
    # o_ref : (bt, T, cp)   output tokens (written at the last L-block)
    # m_sc  : (bt, T, 1)    f32 running max        (online softmax)
    # l_sc  : (bt, T, 1)    f32 running denominator
    # acc_sc: (bt, T, cp)   f32 running unnormalized numerator
    k = pl.program_id(1)

    @pl.when(k == 0)
    def _():
        m_sc[...] = jnp.full_like(m_sc, -jnp.inf)
        l_sc[...] = jnp.zeros_like(l_sc)
        acc_sc[...] = jnp.zeros_like(acc_sc)

    cp = x_ref.shape[-1]

    # ---- Fused first matmul over all bt images in this tile ---------------
    # (bt, tl, cp) -> (bt*tl, cp) is a free reshape (tl is a multiple of 128,
    # so the VMEM tile layout is unchanged).  One MXU call replaces bt
    # separate push/drain sequences:  s_all = W @ X^T  -> (T, bt*tl), f32 acc.
    x2 = x_ref[...].reshape(bt * tl, cp)
    s_all = lax.dot_general(
        w_ref[...], x2,
        dimension_numbers=(((1,), (1,)), ((), ())),
        preferred_element_type=jnp.float32,
    )

    # L-padding mask: generated only if padding exists at all (trace-time
    # check).  The threshold depends on the L-block index k, so on every
    # non-final block the select is a no-op; in this dense (T, tl) layout the
    # whole thing is a handful of vregs per block -- invisible next to DMA.
    need_mask = (l_actual % tl) != 0
    if need_mask:
        limit = l_actual - k * tl                           # traced scalar
        col = lax.broadcasted_iota(jnp.int32, (1, tl), 1)
        valid = col < limit                                 # (1, tl)

    # ---- Per-image online softmax + second matmul --------------------------
    # Each iteration only touches a free (T, tl) lane slice of s_all plus
    # tiny (T, 1)/(T, cp) statistics; the heavy x operand streams from VMEM
    # straight into the MXU, so this short static loop carries little live
    # vector state (unlike the old per-image first-matmul unroll).
    for b in range(bt):
        s = s_all[:, b * tl:(b + 1) * tl]                   # (T, tl)
        if need_mask:
            s = jnp.where(valid, s, -1e30)

        m_prev = m_sc[b]                                    # (T, 1)
        m_new = jnp.maximum(m_prev, jnp.max(s, axis=-1, keepdims=True))
        alpha = jnp.exp(m_prev - m_new)                     # (T, 1)
        p = jnp.exp(s - m_new)                              # (T, tl) f32

        xb = x_ref[b]                                       # (tl, cp) native
        l_sc[b] = alpha * l_sc[b] + jnp.sum(p, axis=-1, keepdims=True)
        # p is cast to the input dtype for the MXU feed (no-op when x is f32,
        # standard flash-attention practice when x is bf16); acc stays f32.
        acc_sc[b] = alpha * acc_sc[b] + jnp.dot(
            p.astype(xb.dtype), xb, preferred_element_type=jnp.float32)
        m_sc[b] = m_new

    @pl.when(k == pl.num_programs(1) - 1)
    def _():
        # Exact reciprocal: runs once per batch-block on a tiny (bt, T, 1)
        # tensor, so the EUP approximation would save nothing but accuracy.
        inv_l = pl.reciprocal(l_sc[...], approx=False)
        o_ref[...] = (acc_sc[...] * inv_l).astype(o_ref.dtype)


def visual_tokenizer(x, weight, *, tl_max=4096, bt_max=8,
                     x_tile_budget_bytes=8 * 1024 * 1024,
                     x_buffers=2, compute_dtype=None):
    """x: (N, H, W, C) or (N, L, C); weight: (hidden_dim, in_dim).

    compute_dtype: optionally cast x/weight (e.g. jnp.bfloat16) to halve HBM
    traffic for this bandwidth-bound op; accumulation remains f32.
    x_buffers: pipeline depth for the x input (2 default; 3 to hide DMA issue
    latency on v7x once tiles are large).
    """
    n = x.shape[0]
    c = x.shape[-1]
    out_dtype = x.dtype

    xf = x.reshape(n, -1, c)
    if compute_dtype is not None:
        xf = xf.astype(compute_dtype)
    L = xf.shape[1]
    T = weight.shape[0]
    weight = weight.astype(xf.dtype)

    # Lane-dense channel padding (C -> multiple of 128); zero columns do not
    # change scores and produce zero output columns sliced off below.
    cp = _round_up(max(c, 128), 128)
    if cp != c:
        xf = jnp.pad(xf, ((0, 0), (0, 0), (0, cp - c)))
        weight = jnp.pad(weight, ((0, 0), (0, cp - c)))

    itemsize = jnp.dtype(xf.dtype).itemsize
    out_itemsize = jnp.dtype(out_dtype).itemsize

    # ---- L tiling: fill the per-buffer tile budget with a long L tile ------
    lr = _round_up(L, 128)
    budget_tl = max(128, (x_tile_budget_bytes // (cp * itemsize)) // 128 * 128)
    tl_cap = max(128, min(tl_max, lr, budget_tl))
    nl = _cdiv(lr, tl_cap)                    # number of L blocks
    tl = _round_up(_cdiv(L, nl), 128)         # minimizes L padding for nl
    lp = nl * tl
    if lp != L:
        xf = jnp.pad(xf, ((0, 0), (0, lp - L), (0, 0)))   # masked in-kernel

    # ---- Batch tiling: keep >= 2 batch blocks whenever N >= 2 so the
    # "parallel" grid axis can be sharded across v7x's two TensorCores.
    bt_cap = min(bt_max, max(1, n // 2)) if n > 1 else 1
    bt = 1
    for cand in range(1, bt_cap + 1):
        if n % cand == 0 and cand * tl * cp * itemsize <= x_tile_budget_bytes:
            bt = cand
    grid = (n // bt, nl)

    # ---- Explicit VMEM budget (pipeline buffers + output + scratch) --------
    t_pad = _round_up(max(T, 8), 8)
    vmem_need = (
        x_buffers * bt * tl * cp * itemsize      # pipelined x tiles
        + 2 * t_pad * cp * itemsize              # weight (double-buffered)
        + 2 * bt * t_pad * cp * out_itemsize     # output block
        + bt * t_pad * cp * 4                    # f32 accumulator scratch
        + 2 * bt * t_pad * 128 * 4               # running max / denominator
    )
    vmem_limit = min(max(int(vmem_need * 1.5) + (2 << 20), 16 << 20), 48 << 20)

    cost = pl.CostEstimate(
        flops=int(4 * n * lp * T * cp),
        transcendentals=int(n * lp * T),
        bytes_accessed=int(n * lp * cp * itemsize
                           + n * T * cp * out_itemsize
                           + T * cp * itemsize),
    )

    x_spec_kwargs = {}
    if x_buffers != 2:
        x_spec_kwargs["pipeline_mode"] = pl.Buffered(x_buffers)
    x_spec = pl.BlockSpec((bt, tl, cp), lambda i, k: (i, k, 0), **x_spec_kwargs)

    kernel = functools.partial(_tokenizer_kernel, l_actual=L, tl=tl, bt=bt)

    out_p = pl.pallas_call(
        kernel,
        out_shape=jax.ShapeDtypeStruct((n, T, cp), out_dtype),
        grid_spec=pltpu.PrefetchScalarGridSpec(
            num_scalar_prefetch=0,
            grid=grid,
            in_specs=[
                x_spec,                                        # x tile
                pl.BlockSpec((T, cp), lambda i, k: (0, 0)),    # weight
            ],
            out_specs=pl.BlockSpec((bt, T, cp), lambda i, k: (i, 0, 0)),
            scratch_shapes=[
                pltpu.VMEM((bt, T, 1), jnp.float32),    # running max
                pltpu.VMEM((bt, T, 1), jnp.float32),    # running denom
                pltpu.VMEM((bt, T, cp), jnp.float32),   # running numerator
            ],
        ),
        compiler_params=pltpu.CompilerParams(
            dimension_semantics=("parallel", "arbitrary"),
            vmem_limit_bytes=vmem_limit,
        ),
        cost_estimate=cost,
    )(xf, weight)

    return out_p[:, :, :c] if cp != c else out_p


def _reference(x, weight):
    # Pure-JAX reference mirroring the PyTorch forward exactly (f32 math).
    n = x.shape[0]
    c = x.shape[-1]
    xf = x.reshape(n, -1, c).astype(jnp.float32)                      # (N, L, C)
    wf = weight.astype(jnp.float32)
    scores = jnp.einsum("nlc,tc->nlt", xf, wf, precision=lax.Precision.HIGHEST)
    attn = jax.nn.softmax(jnp.transpose(scores, (0, 2, 1)), axis=-1)  # (N, T, L)
    out = jnp.einsum("ntl,nlc->ntc", attn, xf, precision=lax.Precision.HIGHEST)
    return out.astype(x.dtype)


if __name__ == "__main__":
    key = jax.random.PRNGKey(0)
    k_x, k_w = jax.random.split(key)

    N, H, W, C = 2, 16, 16, 32
    HIDDEN = 8

    x = jax.random.normal(k_x, (N, H, W, C), dtype=jnp.float32)
    # nn.Linear weight shape is (out_features, in_features) = (hidden_dim, in_dim)
    w = (jax.random.normal(k_w, (HIDDEN, C), dtype=jnp.float32)
         * (1.0 / jnp.sqrt(C)))

    out = jax.block_until_ready(visual_tokenizer(x, w))
    ref = _reference(x, w)

    assert out.shape == (N, HIDDEN, C), out.shape
    # Exact final reciprocal + f32 accumulation: tight tolerance vs the
    # highest-precision reference.
    assert jnp.allclose(out, ref, atol=1e-3, rtol=1e-3), "mismatch vs reference"

    print("KERNEL_OK")
</pallas_src>

<mosaic_0001>
module attributes {stable_mosaic.version = 11 : i64} {
  func.func @_tokenizer_kernel(%arg0: i32, %arg1: i32, %arg2: memref<1x256x128xf32, #tpu.memory_space<vmem>>, %arg3: memref<8x128xf32, #tpu.memory_space<vmem>>, %arg4: memref<1x8x128xf32, #tpu.memory_space<vmem>>, %arg5: memref<1x8x1xf32, #tpu.memory_space<vmem>>, %arg6: memref<1x8x1xf32, #tpu.memory_space<vmem>>, %arg7: memref<1x8x128xf32, #tpu.memory_space<vmem>>) attributes {dimension_semantics = [#tpu.dimension_semantics<parallel>, #tpu.dimension_semantics<arbitrary>], iteration_bounds = array<i64: 2, 1>, scalar_prefetch = 0 : i64, scratch_operands = 3 : i64, tpu.core_type = #tpu.core_type<tc>, window_params = [{transform_indices = @transform_0, window_bounds = array<i64: 1, 256, 128>}, {pipeline_mode = #tpu.pipeline_mode<synchronous>, transform_indices = @transform_1, window_bounds = array<i64: 8, 128>}, {transform_indices = @transform_2, window_bounds = array<i64: 1, 8, 128>}]} {
    %c0_i32 = arith.constant 0 : i32
    %0 = arith.cmpi eq, %arg1, %c0_i32 : i32
    %1 = arith.extui %0 : i1 to i32
    %c0_i32_0 = arith.constant 0 : i32
    %2 = arith.cmpi ne, %1, %c0_i32_0 : i32
    scf.if %2 {
      %cst_31 = arith.constant 0xFF800000 : f32
      %43 = vector.broadcast %cst_31 : f32 to vector<1x8x1xf32>
      %c0_32 = arith.constant 0 : index
      %c0_33 = arith.constant 0 : index
      %c0_34 = arith.constant 0 : index
      %44 = vector.load %arg5[%c0_32, %c0_33, %c0_34] : memref<1x8x1xf32, #tpu.memory_space<vmem>>, vector<1x8x1xf32>
      tpu.vector_store %arg5[%c0_32, %c0_33, %c0_34], %43 {strides = array<i32>} : memref<1x8x1xf32, #tpu.memory_space<vmem>>, vector<1x8x1xf32>,
      %cst_35 = arith.constant 0.000000e+00 : f32
      %45 = vector.broadcast %cst_35 : f32 to vector<1x8x1xf32>
      %c0_36 = arith.constant 0 : index
      %c0_37 = arith.constant 0 : index
      %c0_38 = arith.constant 0 : index
      %46 = vector.load %arg6[%c0_36, %c0_37, %c0_38] : memref<1x8x1xf32, #tpu.memory_space<vmem>>, vector<1x8x1xf32>
      tpu.vector_store %arg6[%c0_36, %c0_37, %c0_38], %45 {strides = array<i32>} : memref<1x8x1xf32, #tpu.memory_space<vmem>>, vector<1x8x1xf32>,
      %cst_39 = arith.constant 0.000000e+00 : f32
      %47 = vector.broadcast %cst_39 : f32 to vector<1x8x128xf32>
      %c0_40 = arith.constant 0 : index
      %c0_41 = arith.constant 0 : index
      %c0_42 = arith.constant 0 : index
      %48 = vector.load %arg7[%c0_40, %c0_41, %c0_42] : memref<1x8x128xf32, #tpu.memory_space<vmem>>, vector<1x8x128xf32>
      tpu.vector_store %arg7[%c0_40, %c0_41, %c0_42], %47 {strides = array<i32>} : memref<1x8x128xf32, #tpu.memory_space<vmem>>, vector<1x8x128xf32>,
    } else {
    }
    %c0 = arith.constant 0 : index
    %c0_1 = arith.constant 0 : index
    %c0_2 = arith.constant 0 : index
    %3 = vector.load %arg2[%c0, %c0_1, %c0_2] : memref<1x256x128xf32, #tpu.memory_space<vmem>>, vector<1x256x128xf32>
    %4 = vector.shape_cast %3 : vector<1x256x128xf32> to vector<256x128xf32>
    %c0_3 = arith.constant 0 : index
    %c0_4 = arith.constant 0 : index
    %5 = vector.load %arg3[%c0_3, %c0_4] : memref<8x128xf32, #tpu.memory_space<vmem>>, vector<8x128xf32>
    %cst = arith.constant dense<0.000000e+00> : vector<8x256xf32>
    %6 = tpu.matmul %5, %4, %cst {dimension_numbers = #tpu.dot_dimension_numbers<[1], [1], [0], [0], [0, 0, 1, 0], [], []>} : vector<8x128xf32>, vector<256x128xf32>, vector<8x256xf32> -> vector<8x256xf32>
    %c0_5 = arith.constant 0 : index
    %c0_6 = arith.constant 0 : index
    %c0_7 = arith.constant 0 : index
    %7 = vector.load %arg5[%c0_5, %c0_6, %c0_7] : memref<1x8x1xf32, #tpu.memory_space<vmem>>, vector<1x8x1xf32>
    %8 = vector.shape_cast %7 : vector<1x8x1xf32> to vector<8x1xf32>
    %cst_8 = arith.constant dense<0xFF800000> : vector<8xf32>
    %9 = vector.multi_reduction <maximumf>, %6, %cst_8 [1] : vector<8x256xf32> to vector<8xf32>
    %10 = vector.shape_cast %9 : vector<8xf32> to vector<8x1xf32>
    %11 = arith.maximumf %8, %10 : vector<8x1xf32>
    %12 = arith.subf %8, %11 : vector<8x1xf32>
    %13 = math.exp %12 : vector<8x1xf32>
    %14 = vector.broadcast %11 : vector<8x1xf32> to vector<8x256xf32>
    %15 = arith.subf %6, %14 : vector<8x256xf32>
    %16 = math.exp %15 : vector<8x256xf32>
    %c0_9 = arith.constant 0 : index
    %c0_10 = arith.constant 0 : index
    %c0_11 = arith.constant 0 : index
    %17 = vector.load %arg2[%c0_9, %c0_10, %c0_11] : memref<1x256x128xf32, #tpu.memory_space<vmem>>, vector<1x256x128xf32>
    %18 = vector.shape_cast %17 : vector<1x256x128xf32> to vector<256x128xf32>
    %c0_12 = arith.constant 0 : index
    %c0_13 = arith.constant 0 : index
    %c0_14 = arith.constant 0 : index
    %19 = vector.load %arg6[%c0_12, %c0_13, %c0_14] : memref<1x8x1xf32, #tpu.memory_space<vmem>>, vector<1x8x1xf32>
    %20 = vector.shape_cast %19 : vector<1x8x1xf32> to vector<8x1xf32>
    %21 = arith.mulf %13, %20 : vector<8x1xf32>
    %cst_15 = arith.constant dense<0.000000e+00> : vector<8xf32>
    %22 = vector.multi_reduction <add>, %16, %cst_15 [1] : vector<8x256xf32> to vector<8xf32>
    %23 = vector.shape_cast %22 : vector<8xf32> to vector<8x1xf32>
    %24 = arith.addf %21, %23 : vector<8x1xf32>
    %c0_16 = arith.constant 0 : index
    %c0_17 = arith.constant 0 : index
    %c0_18 = arith.constant 0 : index
    %25 = vector.load %arg6[%c0_16, %c0_17, %c0_18] : memref<1x8x1xf32, #tpu.memory_space<vmem>>, vector<1x8x1xf32>
    %26 = vector.shape_cast %25 : vector<1x8x1xf32> to vector<8x1xf32>
    %27 = vector.shape_cast %24 : vector<8x1xf32> to vector<1x8x1xf32>
    tpu.vector_store %arg6[%c0_16, %c0_17, %c0_18], %27 {strides = array<i32>} : memref<1x8x1xf32, #tpu.memory_space<vmem>>, vector<1x8x1xf32>,
    %c0_19 = arith.constant 0 : index
    %c0_20 = arith.constant 0 : index
    %c0_21 = arith.constant 0 : index
    %28 = vector.load %arg7[%c0_19, %c0_20, %c0_21] : memref<1x8x128xf32, #tpu.memory_space<vmem>>, vector<1x8x128xf32>
    %29 = vector.shape_cast %28 : vector<1x8x128xf32> to vector<8x128xf32>
    %30 = vector.broadcast %13 : vector<8x1xf32> to vector<8x128xf32>
    %31 = arith.mulf %30, %29 : vector<8x128xf32>
    %cst_22 = arith.constant dense<0.000000e+00> : vector<8x128xf32>
    %32 = tpu.matmul %16, %18, %cst_22 {dimension_numbers = #tpu.dot_dimension_numbers<[1], [0], [0], [1], [0, 0, 1, 1], [], []>} : vector<8x256xf32>, vector<256x128xf32>, vector<8x128xf32> -> vector<8x128xf32>
    %33 = arith.addf %31, %32 : vector<8x128xf32>
    %c0_23 = arith.constant 0 : index
    %c0_24 = arith.constant 0 : index
    %c0_25 = arith.constant 0 : index
    %34 = vector.load %arg7[%c0_23, %c0_24, %c0_25] : memref<1x8x128xf32, #tpu.memory_space<vmem>>, vector<1x8x128xf32>
    %35 = vector.shape_cast %34 : vector<1x8x128xf32> to vector<8x128xf32>
    %36 = vector.shape_cast %33 : vector<8x128xf32> to vector<1x8x128xf32>
    tpu.vector_store %arg7[%c0_23, %c0_24, %c0_25], %36 {strides = array<i32>} : memref<1x8x128xf32, #tpu.memory_space<vmem>>, vector<1x8x128xf32>,
    %c0_26 = arith.constant 0 : index
    %c0_27 = arith.constant 0 : index
    %c0_28 = arith.constant 0 : index
    %37 = vector.load %arg5[%c0_26, %c0_27, %c0_28] : memref<1x8x1xf32, #tpu.memory_space<vmem>>, vector<1x8x1xf32>
    %38 = vector.shape_cast %37 : vector<1x8x1xf32> to vector<8x1xf32>
    %39 = vector.shape_cast %11 : vector<8x1xf32> to vector<1x8x1xf32>
    tpu.vector_store %arg5[%c0_26, %c0_27, %c0_28], %39 {strides = array<i32>} : memref<1x8x1xf32, #tpu.memory_space<vmem>>, vector<1x8x1xf32>,
    %c0_i32_29 = arith.constant 0 : i32
    %40 = arith.cmpi eq, %arg1, %c0_i32_29 : i32
    %41 = arith.extui %40 : i1 to i32
    %c0_i32_30 = arith.constant 0 : i32
    %42 = arith.cmpi ne, %41, %c0_i32_30 : i32
    scf.if %42 {
      %c0_31 = arith.constant 0 : index
      %c0_32 = arith.constant 0 : index
      %c0_33 = arith.constant 0 : index
      %43 = vector.load %arg6[%c0_31, %c0_32, %c0_33] : memref<1x8x1xf32, #tpu.memory_space<vmem>>, vector<1x8x1xf32>
      %44 = tpu.reciprocal %43 : vector<1x8x1xf32> -> vector<1x8x1xf32>
      %c0_34 = arith.constant 0 : index
      %c0_35 = arith.constant 0 : index
      %c0_36 = arith.constant 0 : index
      %45 = vector.load %arg7[%c0_34, %c0_35, %c0_36] : memref<1x8x128xf32, #tpu.memory_space<vmem>>, vector<1x8x128xf32>
      %46 = vector.broadcast %44 : vector<1x8x1xf32> to vector<1x8x128xf32>
      %47 = arith.mulf %45, %46 : vector<1x8x128xf32>
      %c0_37 = arith.constant 0 : index
      %c0_38 = arith.constant 0 : index
      %c0_39 = arith.constant 0 : index
      %48 = vector.load %arg4[%c0_37, %c0_38, %c0_39] : memref<1x8x128xf32, #tpu.memory_space<vmem>>, vector<1x8x128xf32>
      tpu.vector_store %arg4[%c0_37, %c0_38, %c0_39], %47 {strides = array<i32>} : memref<1x8x128xf32, #tpu.memory_space<vmem>>, vector<1x8x128xf32>,
    } else {
    }
    return
  }
  func.func @transform_0(%arg0: i32, %arg1: i32) -> (i32, i32, i32) {
    %c0_i32 = arith.constant 0 : i32
    %c0_i32_0 = arith.constant 0 : i32
    return %arg0, %arg1, %c0_i32 : i32, i32, i32
  }
  func.func @transform_1(%arg0: i32, %arg1: i32) -> (i32, i32) {
    %c0_i32 = arith.constant 0 : i32
    %c0_i32_0 = arith.constant 0 : i32
    %c0_i32_1 = arith.constant 0 : i32
    return %c0_i32, %c0_i32_0 : i32, i32
  }
  func.func @transform_2(%arg0: i32, %arg1: i32) -> (i32, i32, i32) {
    %c0_i32 = arith.constant 0 : i32
    %c0_i32_0 = arith.constant 0 : i32
    %c0_i32_1 = arith.constant 0 : i32
    return %arg0, %c0_i32, %c0_i32_0 : i32, i32, i32
  }
}

</mosaic_0001>

<bundles_post_ra>
// kernel: tpu_custom_call.1
= control target key start
LH: loop header
LB: loop body
LE: loop exit
PB: predicated region body
PF: predicated region fallthrough
CT: control target
= control target key end

     0   :  { %7 = vsyncpa [#allocation6], 0  ;;  %s952_s0 = inlined_call_operand.hbm [shape: f32[2,256,128], index: 0, kind: input, shape index: {}]   ;;  %s953_s1 = inlined_call_operand.hbm [shape: f32[8,128], index: 1, kind: input, shape index: {}]   ;;  %s954_s2 = inlined_call_operand.hbm [shape: f32[2,8,128], index: 2, kind: output, shape index: {}]  }
   0x1   :  { %9 = vsyncpa [#allocation6 + $0x1], 0 }
   0x2   :  { %10 = vsyncpa [#allocation9], 0 }
   0x3   :  { %11 = vsyncpa [#allocation7], 0 }
   0x4   :  { %13 = vsyncpa [#allocation7 + $0x1], 0  ;;  %s762_s9 = smov 0   ;;  %s764_s10 = smov 0  }
   0x5   :  { %s766_s11 = smov 0   ;;  %s768_s12 = smov 0  }
   0x6   :  { %s770_s13 = smov 0   ;;  %s772_s14 = smov 0  }
   0x7 LB: > { %s487_s15 = sadd.s32 4294967295, %s739_s14   ;;  %s488_s16 = sadd.s32 4294967294, %s739_s14   ;;  %s739_s14 = sphi %s772_s14, %s19_s14   ;;  %s735_s13 = sphi %s770_s13, %s966_s13   ;;  %s731_s12 = sphi %s768_s12, %s965_s12   ;;  %s727_s11 = sphi %s766_s11, %s964_s11   ;;  %s723_s10 = sphi %s764_s10, %s963_s10   ;;  %s719_s9 = sphi %s762_s9, %s962_s9  }
   0x8   : > { %s40_s17 = sadd.s32 1, %s727_s11  ;;  %p47_p0 = scmp.ne.s32.totalorder %s727_s11, %s723_s10 }
   0x9   : > { %p48_p1 = scmp.eq.s32.totalorder %s739_s14, 0  ;;  %p53_p2 = scmp.ne.s32.totalorder %s723_s10, %s719_s9 }
   0xa   : > { %p800_p3 = scmp.eq.s32.totalorder %s487_s15, 0  ;;  %p98_p4 = scmp.eq.s32.totalorder %s487_s15, 1 }
   0xb   : > { %p804_p5 = por %p48_p1, %p47_p0  ;;  %p104_p6 = scmp.eq.s32.totalorder %s488_s16, 1 }
   0xc   : > { %p810_p7 = por %p800_p3, %p53_p2  ;;  %p814_p8 = por %p98_p4, %p47_p0 }
   0xd   : > { %p818_p9 = por %p104_p6, %p53_p2  ;;  %p489_p10 = scmp.ge.s32.totalorder %s739_s14, 1 }
   0xe   : > { %p111_p11 = scmp.lt.s32.totalorder %s739_s14, 3  ;;  %s123_s25 = sshll.u32 %s953_s1, 4  ;;  %s124_s25 = int_to_ptr.hbm [resolvable:$true] %s123_s25 }
   0xf   : > { %s741_s27 = smov [#allocation8]   ;;  %p491_p13 = scmp.ge.s32.totalorder %s739_s14, 2 }
  0x10   : > { %p827_p12 = pnand %p489_p10, %p111_p11  ;;  %s125_s28 = sshll.u32 %s741_s27, 4  ;;  %s126_s28 = int_to_ptr.vmem [resolvable:$true] %s125_s28 }
  0x11   : > { %p525_p1 = scmp.lt.s32.totalorder %s739_s14, 2  ;;  %s31_s30 = sadd.s32 1, %s735_s13 }
  0x12   : > { %p512_p0 = pneg %p827_p12  ;;  %p33_p6 = scmp.ge.s32.totalorder %s31_s30, 2 }
  0x13   : > { %p839_p4 = pnand %p525_p1, %p804_p5  ;;  %s136_s3 = sand.u32 1, %s727_s11  }
  0x14   : > { %p513_p2 = pnand %p512_p0, %p800_p3  ;;  %s968_s30 = smov (%p33_p6, %s31_s30), 0 }
  0x15   : > { %s492_s4 = sshll.u32 %s136_s3, 8  ;;  %s35_s5 = ssub.s32 %s735_s13, %s968_s30 }
  0x16   : > { %515 = dma.hbm_to_vmem [thread:$0]  (!%p513_p2), %s124_s25, 128, %s126_s28, [#allocation9]  }
  0x17   : > { %p38_p10 = scmp.eq.s32.totalorder %s35_s5, 0  ;;  %s503_s6 = sshll.u32 %s735_s13, 8 }
  0x18   : > { %s147_s15 = scalar_lea.hbm %s952_s0, %s503_s6  ;;  %s140_s16 = scalar_lea.vmem [#allocation5], %s492_s4 }
  0x19   : > { %s150_s19 = sshll.u32 %s140_s16, 4  ;;  %s148_s24 = sshll.u32 %s147_s15, 4  ;;  %s151_s19 = int_to_ptr.vmem [resolvable:$true] %s150_s19  ;;  %s149_s24 = int_to_ptr.hbm [resolvable:$true] %s148_s24 }
  0x1a   : > { %s856_s23 = scalar_select %p38_p10, %s727_s11, %s40_s17  }
  0x1b   : > { %s137_s25 = scalar_lea.sflag [#allocation6], %s136_s3  ;;  %s742_s27 = smov 128  }
  0x1c   : > { %s743_s28 = smov 8   ;;  %162 = sbr.rel (%p827_p12) target bundleno = 715 (0x2cb), region = 28 }
  0x1d   : > { %519 = dma.hbm_to_vmem [thread:$0]  (!%p839_p4), %s149_s24, 4096, %s151_s19, %s137_s25, %s742_s27, %s742_s27, %s743_s28  }
  0x1e   : > { %s863_s5 = sand.u32 (!%p827_p12), 1, %s723_s10  }
  0x1f   : > { %s496_s4 = sshll.u32 (!%p827_p12), %s863_s5, 8  ;;  %s165_s17 = scalar_lea.sflag (!%p827_p12), [#allocation6], %s863_s5 }
  0x20   : > { %s867_s6 = scalar_lea.vmem (!%p827_p12), [#allocation5], %s496_s4 }
  0x21   : > { %706 = dma.done.wait (%p810_p7), %s165_s17, 4096  }
  0x22   : > { %708 = vsyncadd (%p810_p7), %s165_s17, 4294963200 }
  0x23   : > { %710 = dma.done.wait (%p800_p3), [#allocation9], 128  }
  0x24   : > { %712 = vsyncadd (%p800_p3), [#allocation9], 4294967168  ;;  %v219_v0 = vld [vmem:[%s867_s6 + $0x78] sm:$0xff]  ;;  %v218_v2 = vld [vmem:[%s867_s6 + $0x70] sm:$0xff]  ;;  %vm200_vm0 = vcmask 7168   ;;  %v744_v33 = vmov -inf  }
  0x25   : > { %v235_v1 = vld [vmem:[%s867_s6 + $0xf8] sm:$0xff]  ;;  %237 = vmatpush.xpose.msra.mxu0 %v219_v0  ;;  %v234_v3 = vld [vmem:[%s867_s6 + $0xf0] sm:$0xff]  ;;  %311 = vmatpush.msra.mxu2 %v219_v0  ;;  %v217_v4 = vld [vmem:[%s867_s6 + $0x68] sm:$0xff]  ;;  %201 = vst.msk [vmem:[#allocation2] sm:$0xff] %vm200_vm0, %v744_v33  ;;  %v745_v37 = vmov 0   ;;  %v746_v38 = vmov 0.0  }
  0x26   : > { %257 = vmatpush.xpose.msra.mxu1 %v235_v1  ;;  %331 = vmatpush.msra.mxu3 %v235_v1  ;;  %v233_v5 = vld [vmem:[%s867_s6 + $0xe8] sm:$0xff]  ;;  %v216_v6 = vld [vmem:[%s867_s6 + $0x60] sm:$0xff]  ;;  %v215_v8 = vld [vmem:[%s867_s6 + $0x58] sm:$0xff]  ;;  %202 = vst.msk [vmem:[#allocation3] sm:$0xff] %vm200_vm0, %v746_v38  ;;  %s498_s18 = sshll.u32 %s863_s5, 3  ;;  %s500_s20 = sshll.u32 %s731_s12, 3 }
  0x27   : > { %312 = vmatpush.msra.mxu2 %v218_v2  ;;  %v232_v7 = vld [vmem:[%s867_s6 + $0xe0] sm:$0xff]  ;;  %v231_v9 = vld [vmem:[%s867_s6 + $0xd8] sm:$0xff]  ;;  %v214_v10 = vld [vmem:[%s867_s6 + $0x50] sm:$0xff]  ;;  %582 = vset.pattern.permute.xlu0 %v745_v37  ;;  %s391_s3 = scalar_lea.hbm %s954_s2, %s500_s20  ;;  %s194_s7 = scalar_lea.vmem [#allocation10], %s498_s18 }
  0x28   : > { %332 = vmatpush.msra.mxu3 %v234_v3  ;;  %v230_v11 = vld [vmem:[%s867_s6 + $0xd0] sm:$0xff]  ;;  %v213_v12 = vld [vmem:[%s867_s6 + $0x48] sm:$0xff]  ;;  %v212_v14 = vld [vmem:[%s867_s6 + $0x40] sm:$0xff]  ;;  %583 = vset.pattern.permute.xlu1 %v745_v37  ;;  %s393_s8 = sshll.u32 %s194_s7, 4  ;;  %s395_s15 = sshll.u32 %s391_s3, 4  ;;  %s394_s8 = int_to_ptr.vmem [resolvable:$true] %s393_s8  ;;  %s396_s15 = int_to_ptr.hbm [resolvable:$true] %s395_s15 }
  0x29   : > { %238 = vmatpush.xpose.msra.mxu0 %v218_v2  ;;  %313 = vmatpush.msra.mxu2 %v217_v4  ;;  %v229_v13 = vld [vmem:[%s867_s6 + $0xc8] sm:$0xff]  ;;  %v228_v15 = vld [vmem:[%s867_s6 + $0xc0] sm:$0xff]  ;;  %v211_v16 = vld [vmem:[%s867_s6 + $0x38] sm:$0xff]  ;;  %s381_s16 = scalar_lea.sflag [#allocation7], %s863_s5  ;;  %s667_s12 = sshra.s32 %s396_s15, 4  ;;  %s668_s12 = int_to_ptr.hbm [resolvable:$true] %s667_s12 }
  0x2a   : > { %258 = vmatpush.xpose.msra.mxu1 %v234_v3  ;;  %333 = vmatpush.msra.mxu3 %v233_v5  ;;  %v227_v17 = vld [vmem:[%s867_s6 + $0xb8] sm:$0xff]  ;;  %v210_v18 = vld [vmem:[%s867_s6 + $0x30] sm:$0xff]  ;;  %v209_v20 = vld [vmem:[%s867_s6 + $0x28] sm:$0xff]  ;;  %s669_s19 = scalar_lea.hbm %s668_s12, 8  ;;  %s673_s27 = scalar_lea.hbm %s954_s2, 16 }
  0x2b   : > { %314 = vmatpush.msra.mxu2 %v216_v6  ;;  %v226_v19 = vld [vmem:[%s867_s6 + $0xb0] sm:$0xff]  ;;  %v225_v21 = vld [vmem:[%s867_s6 + $0xa8] sm:$0xff]  ;;  %v208_v22 = vld [vmem:[%s867_s6 + $0x20] sm:$0xff]  ;;  %584 = vset.pattern.permute.xlu2 %v745_v37  ;;  %p670_p3 = scmp.ne.s32.totalorder %s668_s12, %s669_s19  ;;  %p674_p11 = scmp.lt.s32.totalorder %s668_s12, %s954_s2 }
  0x2c   : > { %334 = vmatpush.msra.mxu3 %v232_v7  ;;  %v224_v23 = vld [vmem:[%s867_s6 + $0xa0] sm:$0xff]  ;;  %v207_v24 = vld [vmem:[%s867_s6 + $0x18] sm:$0xff]  ;;  %v206_v26 = vld [vmem:[%s867_s6 + $0x10] sm:$0xff]  ;;  %p675_p12 = scmp.lt.s32.totalorder %s673_s27, %s669_s19 }
  0x2d   : > { %239 = vmatpush.xpose.msra.mxu0 %v217_v4  ;;  %315 = vmatpush.msra.mxu2 %v215_v8  ;;  %v223_v25 = vld [vmem:[%s867_s6 + $0x98] sm:$0xff]  ;;  %v222_v27 = vld [vmem:[%s867_s6 + $0x90] sm:$0xff]  ;;  %v205_v28 = vld [vmem:[%s867_s6 + $0x8] sm:$0xff]  ;;  %p671_p5 = pnand %p670_p3, %p814_p8 }
  0x2e   : > { %259 = vmatpush.xpose.msra.mxu1 %v233_v5  ;;  %335 = vmatpush.msra.mxu3 %v231_v9  ;;  %v221_v29 = vld [vmem:[%s867_s6 + $0x88] sm:$0xff]  ;;  %v204_v30 = vld [vmem:[%s867_s6] sm:$0xff]  ;;  %v277_v39 = vld [vmem:[#allocation2] sm:$0xff]  ;;  %p676_p0 = por %p675_p12, %p674_p11 }
  0x2f   : > { %316 = vmatpush.msra.mxu2 %v214_v10  ;;  %v220_v31 = vld [vmem:[%s867_s6 + $0x80] sm:$0xff]  ;;  %v296_v53 = vld [vmem:[#allocation3] sm:$0xff]  ;;  %p672_p7 = pneg %p671_p5 }
  0x30   : > { %336 = vmatpush.msra.mxu3 %v230_v11  ;;  %v236_v32 = vld [vmem:[#allocation8] sm:$0xff] }
  0x31   : > { %240 = vmatpush.xpose.msra.mxu0 %v216_v6  ;;  %317 = vmatpush.msra.mxu2 %v213_v12  ;;  %p677_p1 = pnand %p676_p0, %p672_p7 }
  0x32   : > { %260 = vmatpush.xpose.msra.mxu1 %v232_v7  ;;  %337 = vmatpush.msra.mxu3 %v229_v13 }
  0x33   : > { %318 = vmatpush.msra.mxu2 %v212_v14 }
  0x34   : > { %338 = vmatpush.msra.mxu3 %v228_v15 }
  0x35   : > { %241 = vmatpush.xpose.msra.mxu0 %v215_v8  ;;  %319 = vmatpush.msra.mxu2 %v211_v16 }
  0x36   : > { %261 = vmatpush.xpose.msra.mxu1 %v231_v9  ;;  %339 = vmatpush.msra.mxu3 %v227_v17 }
  0x37   : > { %320 = vmatpush.msra.mxu2 %v210_v18 }
  0x38   : > { %340 = vmatpush.msra.mxu3 %v226_v19 }
  0x39   : > { %242 = vmatpush.xpose.msra.mxu0 %v214_v10  ;;  %321 = vmatpush.msra.mxu2 %v209_v20 }
  0x3a   : > { %262 = vmatpush.xpose.msra.mxu1 %v230_v11  ;;  %341 = vmatpush.msra.mxu3 %v225_v21 }
  0x3b   : > { %322 = vmatpush.msra.mxu2 %v208_v22 }
  0x3c   : > { %342 = vmatpush.msra.mxu3 %v224_v23 }
  0x3d   : > { %243 = vmatpush.xpose.msra.mxu0 %v213_v12  ;;  %323 = vmatpush.msra.mxu2 %v207_v24 }
  0x3e   : > { %263 = vmatpush.xpose.msra.mxu1 %v229_v13  ;;  %343 = vmatpush.msra.mxu3 %v223_v25 }
  0x3f   : > { %324 = vmatpush.msra.mxu2 %v206_v26 }
  0x40   : > { %344 = vmatpush.msra.mxu3 %v222_v27 }
  0x41   : > { %244 = vmatpush.xpose.msra.mxu0 %v212_v14  ;;  %325 = vmatpush.msra.mxu2 %v205_v28 }
  0x42   : > { %264 = vmatpush.xpose.msra.mxu1 %v228_v15  ;;  %345 = vmatpush.msra.mxu3 %v221_v29 }
  0x43   : > { %326 = vmatpush.msra.mxu2 %v204_v30 }
  0x44   : > { %346 = vmatpush.msra.mxu3 %v220_v31 }
  0x45   : > { %245 = vmatpush.xpose.msra.mxu0 %v211_v16 }
  0x46   : > { %265 = vmatpush.xpose.msra.mxu1 %v227_v17 }
  0x49   : > { %246 = vmatpush.xpose.msra.mxu0 %v210_v18 }
  0x4a   : > { %266 = vmatpush.xpose.msra.mxu1 %v226_v19 }
  0x4d   : > { %247 = vmatpush.xpose.msra.mxu0 %v209_v20 }
  0x4e   : > { %267 = vmatpush.xpose.msra.mxu1 %v225_v21 }
  0x51   : > { %248 = vmatpush.xpose.msra.mxu0 %v208_v22 }
  0x52   : > { %268 = vmatpush.xpose.msra.mxu1 %v224_v23 }
  0x55   : > { %249 = vmatpush.xpose.msra.mxu0 %v207_v24 }
  0x56   : > { %269 = vmatpush.xpose.msra.mxu1 %v223_v25 }
  0x59   : > { %250 = vmatpush.xpose.msra.mxu0 %v206_v26 }
  0x5a   : > { %270 = vmatpush.xpose.msra.mxu1 %v222_v27 }
  0x5d   : > { %251 = vmatpush.xpose.msra.mxu0 %v205_v28 }
  0x5e   : > { %271 = vmatpush.xpose.msra.mxu1 %v221_v29 }
  0x61   : > { %252 = vmatpush.xpose.msra.mxu0 %v204_v30 }
  0x62   : > { %272 = vmatpush.xpose.msra.mxu1 %v220_v31 }
  0x64   : > { %253 = vmatmul.f32.vlgmr.msra.gmra.mxu0 %v236_v32 }
  0x65   : > { %273 = vmatmul.f32.vlgmr.msra.gmra.mxu1 %v236_v32 }
  0xe1   : > { %v254_v34 = vpop.f32.mrf.mxu0 }
  0xe2   : > { %v274_v35 = vpop.f32.mrf.mxu1 }
  0xe3   : > { %v278_v36 = vmax.f32 %v254_v34, %v274_v35 }
  0xe5   : > { %279 = vmax.xlane.f32.xlu0 %v278_v36 }
 0x158   : > { %v280_v40 = vpop.xlane.xlu0 %279 }
 0x159   : > { %v281_v41 = vmax.f32 %v277_v39, %v280_v40 }
 0x15b   : > { %v282_v42 = vsub.f32 %v277_v39, %v281_v41  ;;  %353 = vst.msk [vmem:[#allocation2] sm:$0xff] %vm200_vm0, %v281_v41  ;;  %287 = vperm.xlu0 %582, %v281_v41  }
 0x15d   : > { %v283_v51 = vmul.f32 1.442695, %v282_v42 }
 0x1cd   : > { %v288_v43 = vpop.permute.xlu0 %287 }
 0x1ce   : > { %v290_v44 = vsub.f32 %v254_v34, %v288_v43  ;;  %v291_v45 = vsub.f32 %v274_v35, %v288_v43 }
 0x1d0   : > { %v292_v46 = vmul.f32 1.442695, %v290_v44  ;;  %v294_v47 = vmul.f32 1.442695, %v291_v45 }
 0x1d2   : > { %585 = vpow2.f32 %v292_v46 }
 0x1d3   : > { %587 = vpow2.f32 %v294_v47 }
 0x1d4   : > { %589 = vpow2.f32 %v283_v51 }
 0x1d8   : > { %v586_v48 = vpop.eup %585 }
 0x1d9   : > { %v588_v49 = vpop.eup %587  ;;  %327 = vmatmul.f32.vlgmr.msra.gmra.mxu2 %v586_v48 }
 0x1da   : > { %347 = vmatmul.f32.vlgmr.msra.gmra.mxu3 %v588_v49  ;;  %v298_v50 = vadd.f32 %v588_v49, %v586_v48  ;;  %v590_v52 = vpop.eup %589 }
 0x1db   : > { %v297_v54 = vmul.f32 %v590_v52, %v296_v53 }
 0x1dc   : > { %299 = vadd.xlane.f32.xlu1 %v298_v50 }
 0x1f5   : > { %307 = vperm.xlu1 %583, %v590_v52  }
 0x24f   : > { %v300_v55 = vpop.xlane.xlu1 %299 }
 0x250   : > { %v301_v56 = vadd.f32 %v300_v55, %v297_v54 }
 0x252   : > { %303 = vst.msk [vmem:[#allocation3] sm:$0xff] %vm200_vm0, %v301_v56 }
 0x259   : > { %v357_v57 = vld [vmem:[#allocation3] sm:$0xff] }
 0x25a   : > { %591 = vrcp.f32 %v357_v57  ;;  %v369_v61 = vand.u32 2147483648, %v357_v57  ;;  %v367_v63 = vand.u32 2147483647, %v357_v57  ;;  %vm363_vm2 = vweird.f32 %v357_v57 }
 0x25c   : > { %v370_v1 = vor.u32 1.1754944e-38, %v369_v61  ;;  %vm368_vm4 = vcmp.eq.f32.partialorder %v367_v63, 8.507059e+37  ;;  %v328_v5 = vpop.f32.mrf.mxu2 }
 0x25d   : > { %v348_v6 = vpop.f32.mrf.mxu3 }
 0x25e   : > { %v349_v8 = vadd.f32 %v348_v6, %v328_v5 }
 0x260   : > { %v592_v58 = vpop.eup %591 }
 0x261   : > { %v359_v59 = vmul.f32 %v592_v58, %v357_v57  ;;  %vm364_vm1 = vweird.f32 %v592_v58 }
 0x262   : > { %vm365_vm3 = vmor %vm363_vm2, %vm364_vm1 }
 0x263   : > { %v360_v60 = vsub.f32 1.0, %v359_v59 }
 0x265   : > { %v361_v62 = vmul.f32 %v592_v58, %v360_v60 }
 0x267   : > { %v362_v0 = vadd.f32 %v592_v58, %v361_v62  ;;  %v308_v4 = vpop.permute.xlu1 %307 }
 0x268   : > { %v310_v7 = vmul.f32 0.0, %v308_v4 }
 0x269   : > { %v366_v2 = vsel %vm365_vm3, %v592_v58, %v362_v0 }
 0x26a   : > { %v371_v3 = vsel %vm368_vm4, %v370_v1, %v366_v2  ;;  %v351_v9 = vadd.f32 %v349_v8, %v310_v7 }
 0x26b   : > { %375 = vperm.xlu2 %584, %v371_v3  }
 0x2c5   : > { %v376_v10 = vpop.permute.xlu2 %375 }
 0x2c6   : > { %v378_v11 = vmul.f32 %v376_v10, %v351_v9 }
 0x2c8   : > { %379 = vst [vmem:[%s194_s7] sm:$0xff] %v378_v11 }
 0x2c9   : > { %680 = shalt.err (!%p677_p1)
}
 0x2ca   : > { %510 = dma.vmem_to_hbm [thread:$0]  (%p814_p8), %s394_s8, 128, %s396_s15, %s381_s16  }
 0x2cb PF: > { %s407_s5 = sand.u32 1, %s719_s9   ;;  %p521_p2 = pnand %p491_p13, %p818_p9 }
 0x2cc   : > { %s408_s17 = scalar_lea.sflag [#allocation7], %s407_s5 }
 0x2cd   : > { %p522_p4 = pneg %p521_p2 }
 0x2cf   : > { %714 = dma.done.wait (%p522_p4), %s408_s17, 128  }
 0x2d0   : > { %716 = vsyncadd (%p522_p4), %s408_s17, 4294967168  ;;  %s19_s14 = sadd.s32 1, %s739_s14   ;;  %s962_s9 = smov %s723_s10 }
 0x2d1   : > { %p16_p6 = scmp.ge.s32.totalorder %s19_s14, 4   ;;  %s963_s10 = smov %s727_s11 }
 0x2d2   : > { %s964_s11 = smov %s856_s23  ;;  %s965_s12 = smov %s735_s13 }
 0x2d3   : > { %s966_s13 = smov %s968_s30  ;;  %18 = sbr.rel (!%p16_p6) target bundleno = 7 (0x7), region = 85 }
 0x2d8   :  { %414 = vsyncpa [#allocation6], 1 }
 0x2d9   :  { %416 = vsyncpa [#allocation6 + $0x1], 1 }
 0x2da   :  { %417 = vsyncpa [#allocation9], 1 }
 0x2db   :  { %418 = vsyncpa [#allocation7], 1 }
 0x2dc   :  { %420 = vsyncpa [#allocation7 + $0x1], 1 }

</bundles_post_ra>
